<compile_context>
chip_gen: v5e
topology: v5e:2x2
jax: 0.10.0
libtpu: 0.0.40
codegen_flags: <defaults>
</compile_context>

<pallas_src>
import jax
import jax.numpy as jnp
from jax import lax
from jax.experimental import pallas as pl
from jax.experimental.pallas import tpu as pltpu

# --- Config mirroring the PyTorch module ------------------------------------
CONV_OUT = [8, 8, 8]
CONV_KER = [2, 3, 4]

MAX_WORDS = 100   # vocab size
EMB_SIZE  = 32
HID_SIZE  = 16    # stored but unused in forward (matches PyTorch module)
DROPOUT_P = 0.5   # nn.Dropout -> identity in eval mode
N_CLASS   = 4

BATCH = 2
SEQ   = 16

KMAX      = max(CONV_KER)       # 4 taps -> contraction depth KMAX*EMB_SIZE = 128
N_TOT     = sum(CONV_OUT)       # 24 real conv output channels
N_PAD     = 32                  # conv channels padded for lane density
VOCAB_PAD = 128                 # vocab padded to full lane width for one-hot


def _textcnn_kernel(ids_ref, emb_ref, convwb_ref, fcwb_ref, out_ref):
    """ids [B*L,1] + padded emb table / packed weights (all VMEM) -> logits."""
    BL = ids_ref.shape[0]              # B * L
    E = emb_ref.shape[1]               # EMB_SIZE
    VP = emb_ref.shape[0]              # VOCAB_PAD
    K_IN = KMAX * E                    # 128

    # --- one-hot MXU embedding gather ----------------------------------------
    ids = ids_ref[...]                                           # [BL, 1] int32
    lane = lax.broadcasted_iota(jnp.int32, (BL, VP), 1)
    one_hot = jnp.where(lane == ids, 1.0, 0.0).astype(jnp.bfloat16)
    emb_seq = jnp.dot(one_hot, emb_ref[...],
                      preferred_element_type=jnp.float32)        # [BL, E] f32

    # --- vreg-resident im2col: KMAX time-shifted copies along lanes ----------
    # slab[r, j*E:(j+1)*E] = emb_seq[r+j]  (rows past the end -> 0).  Rows that
    # leak across the batch boundary only hit invalid trailing time positions,
    # which are masked below (or hit zero-padded weight rows).
    zpad = jnp.zeros((KMAX, E), jnp.float32)
    padded = jnp.concatenate([emb_seq, zpad], axis=0)            # [BL+KMAX, E]
    slab = jnp.concatenate([padded[j:j + BL, :] for j in range(KMAX)],
                           axis=1).astype(jnp.bfloat16)          # [BL, KMAX*E]

    # --- all 3 convs (all taps) as ONE matmul + bias + ReLU -------------------
    w = convwb_ref[0:K_IN, :]                                    # [128, N_PAD] bf16
    cb = convwb_ref[K_IN:K_IN + 1, :].astype(jnp.float32)        # [1, N_PAD]
    conv = jnp.dot(slab, w, preferred_element_type=jnp.float32) + cb
    conv = jnp.maximum(conv, 0.0)                                # ReLU

    # --- mask invalid trailing time positions (per conv kernel size) ---------
    # built from iotas + scalar constants only (no captured array constants);
    # zero-mask after ReLU is valid because ReLU outputs are >= 0.
    t_idx = lax.broadcasted_iota(jnp.int32, conv.shape, 0) % SEQ
    col = lax.broadcasted_iota(jnp.int32, conv.shape, 1)
    valid_len = jnp.where(
        col < CONV_OUT[0], SEQ - CONV_KER[0] + 1,
        jnp.where(col < CONV_OUT[0] + CONV_OUT[1],
                  SEQ - CONV_KER[1] + 1, SEQ - CONV_KER[2] + 1))
    conv = jnp.where(t_idx < valid_len, conv, 0.0)

    # --- temporal max-pool + concat (columns already in concat order) --------
    feat = jnp.concatenate(
        [jnp.max(conv[b * SEQ:(b + 1) * SEQ, :], axis=0, keepdims=True)
         for b in range(BATCH)], axis=0)                         # [B, N_PAD]

    # TODO(synk): nn.Dropout — identity in eval mode, intentionally omitted.

    # --- final Linear ---------------------------------------------------------
    fw = fcwb_ref[0:N_PAD, :]                                    # [N_PAD, C] f32
    fb = fcwb_ref[N_PAD:N_PAD + 1, :]                            # [1, C]
    logits = jnp.dot(feat, fw, preferred_element_type=jnp.float32) + fb
    out_ref[...] = logits.astype(out_ref.dtype)


def textcnn_forward(token_ids, params):
    """token_ids: int32 [B, L]. Returns logits [B, n_class] (float32)."""
    B, L = token_ids.shape
    ids = token_ids.reshape(B * L, 1).astype(jnp.int32)
    return pl.pallas_call(
        _textcnn_kernel,
        out_shape=jax.ShapeDtypeStruct((B, N_CLASS), jnp.float32),
        in_specs=[
            pl.BlockSpec(memory_space=pltpu.MemorySpace.VMEM),   # token ids [B*L,1]
            pl.BlockSpec(memory_space=pltpu.MemorySpace.VMEM),   # padded emb table
            pl.BlockSpec(memory_space=pltpu.MemorySpace.VMEM),   # packed conv W|b
            pl.BlockSpec(memory_space=pltpu.MemorySpace.VMEM),   # packed fc  W|b
        ],
        out_specs=pl.BlockSpec(memory_space=pltpu.MemorySpace.VMEM),
    )(ids, params['emb_padded'], params['convwb'], params['fcwb'])


def init_params(key):
    """Deterministic synthetic parameters matching nn.Module shapes, packed."""
    keys = jax.random.split(key, 9)
    emb = jax.random.normal(keys[0], (MAX_WORDS, EMB_SIZE), jnp.float32) * 0.1
    emb_padded = jnp.zeros((VOCAB_PAD, EMB_SIZE), jnp.float32).at[:MAX_WORDS].set(emb)
    emb_padded = emb_padded.astype(jnp.bfloat16)

    # Packed conv weights: W[j*E + e, col+o] = w_torch[o, e, j] (zero for j>=k),
    # channel columns padded 24 -> 32 with zeros.
    convw = jnp.zeros((KMAX * EMB_SIZE, N_PAD), jnp.float32)
    convb = jnp.zeros((1, N_PAD), jnp.float32)
    col = 0
    for i, (o_sz, k) in enumerate(zip(CONV_OUT, CONV_KER)):
        w_torch = jax.random.normal(keys[1 + 2 * i], (o_sz, EMB_SIZE, k),
                                    jnp.float32) * 0.1            # PyTorch [O,E,k]
        b_torch = jax.random.normal(keys[2 + 2 * i], (o_sz,), jnp.float32) * 0.1
        w_keo = jnp.transpose(w_torch, (2, 1, 0)).reshape(k * EMB_SIZE, o_sz)
        convw = convw.at[0:k * EMB_SIZE, col:col + o_sz].set(w_keo)
        convb = convb.at[0, col:col + o_sz].set(b_torch)
        col += o_sz
    convwb = jnp.concatenate([convw, convb], axis=0).astype(jnp.bfloat16)  # [129,32]

    fc_w_torch = jax.random.normal(keys[7], (N_CLASS, N_TOT), jnp.float32) * 0.1
    fc_b = jax.random.normal(keys[8], (1, N_CLASS), jnp.float32) * 0.1
    fcw = jnp.zeros((N_PAD, N_CLASS), jnp.float32).at[:N_TOT, :].set(fc_w_torch.T)
    fcwb = jnp.concatenate([fcw, fc_b], axis=0)                    # [33, C] f32

    return {'emb_padded': emb_padded, 'convwb': convwb, 'fcwb': fcwb}


def reference_forward(token_ids, params):
    """Pure-JAX reference of the PyTorch eval-mode forward (same packed params)."""
    emb_tab = params['emb_padded'].astype(jnp.float32)
    convwb = params['convwb'].astype(jnp.float32)
    fcwb = params['fcwb']
    emb = jnp.take(emb_tab, token_ids, axis=0)                     # [B, L, E]
    feats, col = [], 0
    for o_sz, k in zip(CONV_OUT, CONV_KER):
        w = convwb[0:k * EMB_SIZE, col:col + o_sz].reshape(k, EMB_SIZE, o_sz)
        b = convwb[KMAX * EMB_SIZE, col:col + o_sz]
        T = SEQ - k + 1
        acc = jnp.zeros((BATCH, T, o_sz), jnp.float32) + b[None, None, :]
        for j in range(k):
            acc = acc + jnp.einsum('bte,eo->bto', emb[:, j:j + T, :], w[j],
                                   preferred_element_type=jnp.float32)
        feats.append(jnp.max(jnp.maximum(acc, 0.0), axis=1))
        col += o_sz
    feat = jnp.concatenate(feats, axis=-1)                         # [B, 24]
    return feat @ fcwb[0:N_TOT, :] + fcwb[N_PAD, :][None, :]


if __name__ == "__main__":
    key = jax.random.PRNGKey(0)
    pkey, xkey = jax.random.split(key)
    params = init_params(pkey)

    # token ids: int32 [B, L] in [0, MAX_WORDS)
    x = jax.random.randint(xkey, (BATCH, SEQ), 0, MAX_WORDS, dtype=jnp.int32)

    logits = textcnn_forward(x, params)
    jax.block_until_ready(logits)
    assert logits.shape == (BATCH, N_CLASS)

    ref = reference_forward(x, params)
    assert jnp.allclose(logits, ref, atol=1e-3, rtol=1e-3), (logits, ref)
    print("KERNEL_OK")
</pallas_src>

<mosaic_0001>
module attributes {stable_mosaic.version = 11 : i64} {
  func.func @_textcnn_kernel(%arg0: memref<32x1xi32, #tpu.memory_space<vmem>>, %arg1: memref<128x32xbf16, #tpu.memory_space<vmem>>, %arg2: memref<129x32xbf16, #tpu.memory_space<vmem>>, %arg3: memref<33x4xf32, #tpu.memory_space<vmem>>, %arg4: memref<2x4xf32, #tpu.memory_space<vmem>>) attributes {dimension_semantics = [], scalar_prefetch = 0 : i64, scratch_operands = 0 : i64, tpu.core_type = #tpu.core_type<tc>} {
    %c0 = arith.constant 0 : index
    %c0_0 = arith.constant 0 : index
    %0 = vector.load %arg0[%c0, %c0_0] : memref<32x1xi32, #tpu.memory_space<vmem>>, vector<32x1xi32>
    %1 = tpu.iota {dimensions = array<i32: 1>} : vector<32x128xi32>
    %2 = vector.broadcast %0 : vector<32x1xi32> to vector<32x128xi32>
    %3 = arith.cmpi eq, %1, %2 : vector<32x128xi32>
    %cst = arith.constant 1.000000e+00 : f32
    %cst_1 = arith.constant 0.000000e+00 : f32
    %4 = vector.broadcast %cst : f32 to vector<32x128xf32>
    %5 = vector.broadcast %cst_1 : f32 to vector<32x128xf32>
    %6 = arith.select %3, %4, %5 : vector<32x128xi1>, vector<32x128xf32>
    %7 = arith.truncf %6 : vector<32x128xf32> to vector<32x128xbf16>
    %c0_2 = arith.constant 0 : index
    %c0_3 = arith.constant 0 : index
    %8 = vector.load %arg1[%c0_2, %c0_3] : memref<128x32xbf16, #tpu.memory_space<vmem>>, vector<128x32xbf16>
    %cst_4 = arith.constant dense<0.000000e+00> : vector<32x32xf32>
    %9 = tpu.matmul %7, %8, %cst_4 {dimension_numbers = #tpu.dot_dimension_numbers<[1], [0], [0], [1], [0, 0, 1, 1], [], []>} : vector<32x128xbf16>, vector<128x32xbf16>, vector<32x32xf32> -> vector<32x32xf32>
    %cst_5 = arith.constant 0.000000e+00 : f32
    %10 = vector.broadcast %cst_5 : f32 to vector<4x32xf32>
    %11 = tpu.concatenate %9, %10 in 0 : vector<32x32xf32>, vector<4x32xf32> -> vector<36x32xf32>
    %12 = vector.extract_strided_slice %11 {offsets = [0, 0], sizes = [32, 32], strides = [1, 1]} : vector<36x32xf32> to vector<32x32xf32>
    %13 = vector.extract_strided_slice %11 {offsets = [1, 0], sizes = [32, 32], strides = [1, 1]} : vector<36x32xf32> to vector<32x32xf32>
    %14 = vector.extract_strided_slice %11 {offsets = [2, 0], sizes = [32, 32], strides = [1, 1]} : vector<36x32xf32> to vector<32x32xf32>
    %15 = vector.extract_strided_slice %11 {offsets = [3, 0], sizes = [32, 32], strides = [1, 1]} : vector<36x32xf32> to vector<32x32xf32>
    %16 = tpu.concatenate %12, %13, %14, %15 in 1 : vector<32x32xf32>, vector<32x32xf32>, vector<32x32xf32>, vector<32x32xf32> -> vector<32x128xf32>
    %17 = arith.truncf %16 : vector<32x128xf32> to vector<32x128xbf16>
    %c0_6 = arith.constant 0 : index
    %c0_7 = arith.constant 0 : index
    %18 = vector.load %arg2[%c0_6, %c0_7] : memref<129x32xbf16, #tpu.memory_space<vmem>>, vector<128x32xbf16>
    %c128 = arith.constant 128 : index
    %c0_8 = arith.constant 0 : index
    %19 = vector.load %arg2[%c128, %c0_8] : memref<129x32xbf16, #tpu.memory_space<vmem>>, vector<1x32xbf16>
    %20 = arith.extf %19 : vector<1x32xbf16> to vector<1x32xf32>
    %cst_9 = arith.constant dense<0.000000e+00> : vector<32x32xf32>
    %21 = tpu.matmul %17, %18, %cst_9 {dimension_numbers = #tpu.dot_dimension_numbers<[1], [0], [0], [1], [0, 0, 1, 1], [], []>} : vector<32x128xbf16>, vector<128x32xbf16>, vector<32x32xf32> -> vector<32x32xf32>
    %22 = vector.broadcast %20 : vector<1x32xf32> to vector<32x32xf32>
    %23 = arith.addf %21, %22 : vector<32x32xf32>
    %cst_10 = arith.constant 0.000000e+00 : f32
    %24 = vector.broadcast %cst_10 : f32 to vector<32x32xf32>
    %25 = arith.maximumf %23, %24 : vector<32x32xf32>
    %26 = tpu.iota {dimensions = array<i32: 0>} : vector<32x32xi32>
    %c16_i32 = arith.constant 16 : i32
    %c0_i32 = arith.constant 0 : i32
    %27 = arith.cmpi eq, %c16_i32, %c0_i32 : i32
    %c1_i32 = arith.constant 1 : i32
    %28 = arith.select %27, %c1_i32, %c16_i32 : i32
    %29 = vector.broadcast %28 : i32 to vector<32x32xi32>
    %30 = arith.remsi %26, %29 : vector<32x32xi32>
    %c0_i32_11 = arith.constant 0 : i32
    %31 = vector.broadcast %c0_i32_11 : i32 to vector<32x32xi32>
    %32 = arith.cmpi ne, %30, %31 : vector<32x32xi32>
    %c0_i32_12 = arith.constant 0 : i32
    %33 = vector.broadcast %c0_i32_12 : i32 to vector<32x32xi32>
    %34 = arith.cmpi slt, %30, %33 : vector<32x32xi32>
    %c0_i32_13 = arith.constant 0 : i32
    %35 = arith.cmpi slt, %28, %c0_i32_13 : i32
    %36 = vector.broadcast %35 : i1 to vector<32x32xi1>
    %37 = vector.broadcast %36 : vector<32x32xi1> to vector<32x32xi1>
    %38 = arith.xori %34, %37 : vector<32x32xi1>
    %39 = arith.andi %38, %32 : vector<32x32xi1>
    %40 = vector.broadcast %28 : i32 to vector<32x32xi32>
    %41 = arith.addi %30, %40 : vector<32x32xi32>
    %42 = arith.select %39, %41, %30 : vector<32x32xi1>, vector<32x32xi32>
    %43 = tpu.iota {dimensions = array<i32: 1>} : vector<32x32xi32>
    %c8_i32 = arith.constant 8 : i32
    %44 = vector.broadcast %c8_i32 : i32 to vector<32x32xi32>
    %45 = arith.cmpi slt, %43, %44 : vector<32x32xi32>
    %c16_i32_14 = arith.constant 16 : i32
    %46 = vector.broadcast %c16_i32_14 : i32 to vector<32x32xi32>
    %47 = arith.cmpi slt, %43, %46 : vector<32x32xi32>
    %c14_i32 = arith.constant 14 : i32
    %c13_i32 = arith.constant 13 : i32
    %48 = vector.broadcast %c14_i32 : i32 to vector<32x32xi32>
    %49 = vector.broadcast %c13_i32 : i32 to vector<32x32xi32>
    %50 = arith.select %47, %48, %49 : vector<32x32xi1>, vector<32x32xi32>
    %c15_i32 = arith.constant 15 : i32
    %51 = vector.broadcast %c15_i32 : i32 to vector<32x32xi32>
    %52 = arith.select %45, %51, %50 : vector<32x32xi1>, vector<32x32xi32>
    %53 = arith.cmpi slt, %42, %52 : vector<32x32xi32>
    %cst_15 = arith.constant 0.000000e+00 : f32
    %54 = vector.broadcast %cst_15 : f32 to vector<32x32xf32>
    %55 = arith.select %53, %25, %54 : vector<32x32xi1>, vector<32x32xf32>
    %56 = vector.extract_strided_slice %55 {offsets = [0, 0], sizes = [16, 32], strides = [1, 1]} : vector<32x32xf32> to vector<16x32xf32>
    %cst_16 = arith.constant dense<0xFF800000> : vector<32xf32>
    %57 = vector.multi_reduction <maximumf>, %56, %cst_16 [0] : vector<16x32xf32> to vector<32xf32>
    %58 = vector.shape_cast %57 : vector<32xf32> to vector<1x32xf32>
    %59 = vector.extract_strided_slice %55 {offsets = [16, 0], sizes = [16, 32], strides = [1, 1]} : vector<32x32xf32> to vector<16x32xf32>
    %cst_17 = arith.constant dense<0xFF800000> : vector<32xf32>
    %60 = vector.multi_reduction <maximumf>, %59, %cst_17 [0] : vector<16x32xf32> to vector<32xf32>
    %61 = vector.shape_cast %60 : vector<32xf32> to vector<1x32xf32>
    %62 = tpu.concatenate %58, %61 in 0 : vector<1x32xf32>, vector<1x32xf32> -> vector<2x32xf32>
    %c0_18 = arith.constant 0 : index
    %c0_19 = arith.constant 0 : index
    %63 = vector.load %arg3[%c0_18, %c0_19] : memref<33x4xf32, #tpu.memory_space<vmem>>, vector<32x4xf32>
    %c32 = arith.constant 32 : index
    %c0_20 = arith.constant 0 : index
    %64 = vector.load %arg3[%c32, %c0_20] : memref<33x4xf32, #tpu.memory_space<vmem>>, vector<1x4xf32>
    %cst_21 = arith.constant dense<0.000000e+00> : vector<2x4xf32>
    %65 = tpu.matmul %62, %63, %cst_21 {dimension_numbers = #tpu.dot_dimension_numbers<[1], [0], [0], [1], [0, 0, 1, 1], [], []>} : vector<2x32xf32>, vector<32x4xf32>, vector<2x4xf32> -> vector<2x4xf32>
    %66 = vector.broadcast %64 : vector<1x4xf32> to vector<2x4xf32>
    %67 = arith.addf %65, %66 : vector<2x4xf32>
    %c0_22 = arith.constant 0 : index
    %c0_23 = arith.constant 0 : index
    %68 = vector.load %arg4[%c0_22, %c0_23] : memref<2x4xf32, #tpu.memory_space<vmem>>, vector<2x4xf32>
    tpu.vector_store %arg4[%c0_22, %c0_23], %67 {strides = array<i32>} : memref<2x4xf32, #tpu.memory_space<vmem>>, vector<2x4xf32>,
    return
  }
}

</mosaic_0001>

<bundles_post_ra>
// kernel: tpu_custom_call.1
= control target key start
LH: loop header
LB: loop body
LE: loop exit
PB: predicated region body
PF: predicated region fallthrough
CT: control target
= control target key end

     0   :  { %v607_v2 = vmov 0   ;;  %s780_s0 = inlined_call_operand.vmem [shape: s32[32,1], index: 0, kind: input, shape index: {}]   ;;  %s781_s1 = inlined_call_operand.vmem [shape: bf16[128,32], index: 1, kind: input, shape index: {}]   ;;  %s782_s2 = inlined_call_operand.vmem [shape: bf16[129,32], index: 2, kind: input, shape index: {}]   ;;  %s783_s3 = inlined_call_operand.vmem [shape: f32[33,4], index: 3, kind: input, shape index: {}]   ;;  %s784_s4 = inlined_call_operand.hbm [shape: f32[2,4], index: 4, kind: output, shape index: {}]  }
   0x1   :  { %v20_v0 = vld [vmem:[%s780_s0 + $0x10] sm:$0xff]  ;;  %v18_v1 = vld [vmem:[%s780_s0] sm:$0xff]  ;;  %549 = vset.pattern.permute.xlu1 %v607_v2  ;;  %548 = vset.pattern.permute.xlu0 %v607_v2  ;;  %v515_v3 = vld [vmem:[%s781_s1 + $0x38] sm:$0xff] }
   0x2   :  { %31 = vperm.xlu0 %548, %v20_v0   ;;  %25 = vperm.xlu1 %549, %v18_v1   ;;  %v514_v4 = vld [vmem:[%s781_s1 + $0x30] sm:$0xff] }
   0x3   :  { %110 = vmatpush.bf16.msra.mxu0 %v515_v3  ;;  %524 = vmatpush.bf16.msra.mxu3 %v515_v3 }
   0x4   :  { %9 = vsyncpa [#allocation3], 0  ;;  %v21_v5 = vld [vmem:[%s780_s0 + $0x18] sm:$0xff]  ;;  %v19_v6 = vld [vmem:[%s780_s0 + $0x8] sm:$0xff]  ;;  %v22_v15 = vlaneseq  ;;  %v608_v19 = vmov 1.0|1.0  }
   0x5   :  { %v513_v7 = vld [vmem:[%s781_s1 + $0x28] sm:$0xff]  ;;  %v512_v8 = vld [vmem:[%s781_s1 + $0x20] sm:$0xff]  ;;  %v511_v9 = vld [vmem:[%s781_s1 + $0x18] sm:$0xff]  ;;  %vm134_vm6 = vcmask 1046528   ;;  %v609_v30 = vmov 0.0   ;;  %s610_s13 = smov 32  }
   0x6   :  { %v510_v10 = vld [vmem:[%s781_s1 + $0x10] sm:$0xff]  ;;  %v509_v11 = vld [vmem:[%s781_s1 + $0x8] sm:$0xff]  ;;  %v508_v12 = vld [vmem:[%s781_s1] sm:$0xff]  ;;  %v677_v16 = vand.u32 127, %v22_v15  ;;  %v186_v31 = vrot.slane %v609_v30, 3  ;;  %v142_v32 = vrot.slane %v609_v30, 1 }
   0x7   :  { %111 = vmatpush.bf16.msra.mxu0 %v514_v4  ;;  %525 = vmatpush.bf16.msra.mxu3 %v514_v4  ;;  %v523_v21 = vld [vmem:[%s782_s2 + $0x38] sm:$0xff]  ;;  %vm178_vm7 = vcmask 1044480   ;;  %v164_v45 = vrot.slane %v609_v30, 2  ;;  %s611_s14 = smov 96   ;;  %vm156_vm8 = vcmask 1045504   ;;  %s612_s15 = smov 64  }
   0x8   :  { %532 = vmatpush.bf16.msra.mxu2 %v523_v21  ;;  %284 = vmatpush.bf16.msra.mxu1 %v523_v21  ;;  %v522_v59 = vld [vmem:[%s782_s2 + $0x30] sm:$0xff]  ;;  %v521_v60 = vld [vmem:[%s782_s2 + $0x28] sm:$0xff]  ;;  %v520_v61 = vld [vmem:[%s782_s2 + $0x20] sm:$0xff]  ;;  %vm200_vm9 = vcmask 261120   ;;  %vm205_vm10 = vcmask 523264   ;;  %vm210_vm11 = vcmask 785408  }
   0x9   :  { %v519_v62 = vld [vmem:[%s782_s2 + $0x18] sm:$0xff]  ;;  %v518_v63 = vld [vmem:[%s782_s2 + $0x10] sm:$0xff]  ;;  %v517_v0 = vld [vmem:[%s782_s2 + $0x8] sm:$0xff]  ;;  %vm361_vm12 = vcmp.lt.s32.totalorder %v677_v16, 16  ;;  %vm360_vm13 = vcmp.lt.s32.totalorder %v677_v16, 8  ;;  %s430_s17 = sshll.u32 %s784_s4, 4  ;;  %s431_s17 = int_to_ptr.hbm [resolvable:$true] %s430_s17 }
   0xa   :  { %34 = vperm.xlu0 %548, %v21_v5   ;;  %28 = vperm.xlu1 %549, %v19_v6   ;;  %v516_v1 = vld [vmem:[%s782_s2] sm:$0xff] }
   0xb   :  { %112 = vmatpush.bf16.msra.mxu0 %v513_v7  ;;  %526 = vmatpush.bf16.msra.mxu3 %v513_v7 }
   0xc   :  { %533 = vmatpush.bf16.msra.mxu2 %v522_v59  ;;  %285 = vmatpush.bf16.msra.mxu1 %v522_v59 }
   0xf   :  { %113 = vmatpush.bf16.msra.mxu0 %v512_v8  ;;  %527 = vmatpush.bf16.msra.mxu3 %v512_v8 }
  0x10   :  { %534 = vmatpush.bf16.msra.mxu2 %v521_v60  ;;  %286 = vmatpush.bf16.msra.mxu1 %v521_v60 }
  0x13   :  { %114 = vmatpush.bf16.msra.mxu0 %v511_v9  ;;  %528 = vmatpush.bf16.msra.mxu3 %v511_v9 }
  0x14   :  { %535 = vmatpush.bf16.msra.mxu2 %v520_v61  ;;  %287 = vmatpush.bf16.msra.mxu1 %v520_v61 }
  0x17   :  { %115 = vmatpush.bf16.msra.mxu0 %v510_v10  ;;  %529 = vmatpush.bf16.msra.mxu3 %v510_v10 }
  0x18   :  { %536 = vmatpush.bf16.msra.mxu2 %v519_v62  ;;  %288 = vmatpush.bf16.msra.mxu1 %v519_v62 }
  0x1b   :  { %116 = vmatpush.bf16.msra.mxu0 %v509_v11  ;;  %530 = vmatpush.bf16.msra.mxu3 %v509_v11 }
  0x1c   :  { %537 = vmatpush.bf16.msra.mxu2 %v518_v63  ;;  %289 = vmatpush.bf16.msra.mxu1 %v518_v63 }
  0x1f   :  { %117 = vmatpush.bf16.msra.mxu0 %v508_v12  ;;  %531 = vmatpush.bf16.msra.mxu3 %v508_v12 }
  0x20   :  { %538 = vmatpush.bf16.msra.mxu2 %v517_v0  ;;  %290 = vmatpush.bf16.msra.mxu1 %v517_v0 }
  0x24   :  { %539 = vmatpush.bf16.msra.mxu2 %v516_v1  ;;  %291 = vmatpush.bf16.msra.mxu1 %v516_v1 }
  0x74   :  { %v32_v13 = vpop.permute.xlu0 %31  ;;  %v26_v14 = vpop.permute.xlu1 %25 }
  0x75   :  { %vm36_vm0 = vcmp.eq.s32.totalorder %v677_v16, %v26_v14  ;;  %vm38_vm1 = vcmp.eq.s32.totalorder %v677_v16, %v32_v13 }
  0x7c   :  { %v35_v17 = vpop.permute.xlu0 %34  ;;  %v29_v18 = vpop.permute.xlu1 %28 }
  0x7d   :  { %vm39_vm2 = vcmp.eq.s32.totalorder %v677_v16, %v35_v17  ;;  %vm37_vm3 = vcmp.eq.s32.totalorder %v677_v16, %v29_v18 }
  0x7e   :  { %vm473_vm4 = vmpackc.low %vm39_vm2, %vm38_vm1  ;;  %vm421_vm1 = vcmask 25600  }
  0x7f   :  { %vm471_vm5 = vmpackc.low %vm37_vm3, %vm36_vm0  ;;  %474 = vmatmul.msk.bf16.vlgmr.msra.gmra.mxu3 %vm473_vm4, %v608_v19  ;;  %vm390_vm0 = vcmask 1040384  }
  0x80   :  { %472 = vmatmul.msk.bf16.vlgmr.msra.gmra.mxu0 %vm471_vm5, %v608_v19 }
  0xfd   :  { %v683_v20 = vpop.f32.mrf.mxu0 }
  0xfe   :  { %v135_v24 = vrot.slane %v683_v20, 1  ;;  %v179_v46 = vrot.slane %v683_v20, 3  ;;  %v157_v55 = vrot.slane %v683_v20, 2 }
 0x102   :  { %v688_v22 = vpop.f32.mrf.mxu3 }
 0x103   :  { %v138_v25 = vrot.slane %v688_v22, 1  ;;  %v182_v34 = vrot.slane %v688_v22, 3  ;;  %v160_v47 = vrot.slane %v688_v22, 2 }
 0x105   :  { %v690_v23 = vpop.f32.mrf.mxu0 }
 0x106   :  { %v136_v26 = vrot.slane %v690_v23, 1  ;;  %v180_v43 = vrot.slane %v690_v23, 3  ;;  %v158_v54 = vrot.slane %v690_v23, 2 }
 0x108   :  { %v137_v27 = vsel %vm134_vm6, %v135_v24, %v136_v26  ;;  %v139_v28 = vsel %vm134_vm6, %v136_v26, %v138_v25  ;;  %v181_v50 = vsel %vm178_vm7, %v179_v46, %v180_v43  ;;  %v183_v51 = vsel %vm178_vm7, %v180_v43, %v182_v34 }
 0x109   :  { %v565_v29 = vpack.i.bf16 %v139_v28, %v137_v27  ;;  %v575_v53 = vpack.i.bf16 %v183_v51, %v181_v50  ;;  %v159_v56 = vsel %vm156_vm8, %v157_v55, %v158_v54  ;;  %v161_v57 = vsel %vm156_vm8, %v158_v54, %v160_v47 }
 0x10a   :  { %v697_v33 = vpop.f32.mrf.mxu3  ;;  %v570_v58 = vpack.i.bf16 %v161_v57, %v159_v56 }
 0x10b   :  { %v140_v35 = vrot.slane %v697_v33, 1  ;;  %v184_v36 = vrot.slane %v697_v33, 3  ;;  %566 = vrot.lane.b32.xlu1 %v565_v29, %s610_s13  ;;  %v162_v44 = vrot.slane %v697_v33, 2 }
 0x10d   :  { %v185_v37 = vsel %vm178_vm7, %v182_v34, %v184_v36  ;;  %v187_v38 = vsel %vm178_vm7, %v184_v36, %v186_v31  ;;  %v141_v39 = vsel %vm134_vm6, %v138_v25, %v140_v35  ;;  %v143_v40 = vsel %vm134_vm6, %v140_v35, %v142_v32 }
 0x10e   :  { %v560_v41 = vpack.i.bf16 %v187_v38, %v185_v37  ;;  %v550_v42 = vpack.i.bf16 %v143_v40, %v141_v39  ;;  %v163_v48 = vsel %vm156_vm8, %v160_v47, %v162_v44  ;;  %v165_v49 = vsel %vm156_vm8, %v162_v44, %v164_v45  ;;  %v233_v38 = vld [vmem:[%s782_s2 + $0x40] sm:$0x1]  ;;  %v393_v39 = vld [vmem:[%s783_s3 + $0x8] sm:$0xff] }
 0x10f   :  { %v555_v52 = vpack.i.bf16 %v165_v49, %v163_v48  ;;  %v392_v40 = vld [vmem:[%s783_s3] sm:$0xff]  ;;  %v613_v47 = vmov 13  }
 0x110   :  { %561 = vrot.lane.b32.xlu0 %v560_v41, %s611_s14  ;;  %551 = vrot.lane.b32.xlu2 %v550_v42, %s610_s13  ;;  %v234_v41 = vunpack.c.l.bf16 %v233_v38  ;;  %v308_v42 = vshrl.u32 %v22_v15, 7  ;;  %v362_v48 = vsel %vm361_vm12, 14, %v613_v47  ;;  %s614_s13 = smov [#allocation2]  }
 0x112   :  { %v235_v44 = vperm.slane %v234_v41, 0  ;;  %v311_v46 = vadd.s32 24, %v308_v42  ;;  %v309_v49 = vadd.s32 8, %v308_v42 }
 0x114   :  { %v337_v51 = vand.u32 15, %v311_v46  ;;  %v323_v55 = vand.u32 15, %v309_v49 }
 0x118   :  { %556 = vrot.lane.b32.xlu2 %v555_v52, %s612_s15  ;;  %576 = vrot.lane.b32.xlu0 %v575_v53, %s611_s14  ;;  %v363_v52 = vsel %vm360_vm13, 15, %v362_v48  ;;  %s428_s14 = sshll.u32 %s614_s13, 4  ;;  %s429_s14 = int_to_ptr.vmem [resolvable:$true] %s428_s14 }
 0x119   :  { %vm367_vm14 = vcmp.lt.s32.totalorder %v337_v51, %v363_v52  ;;  %vm365_vm15 = vcmp.lt.s32.totalorder %v323_v55, %v363_v52 }
 0x120   :  { %571 = vrot.lane.b32.xlu2 %v570_v58, %s612_s15 }
 0x16a   :  { %v552_v2 = vpop.permute.xlu2 %551 }
 0x16b   :  { %v554_v4 = vunpack.i.h.bf16 %v552_v2  ;;  %v553_v5 = vunpack.i.l.bf16 %v552_v2 }
 0x16d   :  { %v204_v10 = vsel %vm200_vm9, %v697_v33, %v554_v4  ;;  %v203_v11 = vsel %vm200_vm9, %v688_v22, %v553_v5 }
 0x172   :  { %v557_v3 = vpop.permute.xlu2 %556 }
 0x173   :  { %v559_v6 = vunpack.i.h.bf16 %v557_v3  ;;  %v558_v7 = vunpack.i.l.bf16 %v557_v3 }
 0x175   :  { %v208_v14 = vsel %vm205_vm10, %v203_v11, %v558_v7  ;;  %v209_v17 = vsel %vm205_vm10, %v204_v10, %v559_v6 }
 0x17a   :  { %v572_v26 = vpop.permute.xlu2 %571 }
 0x17b   :  { %v574_v28 = vunpack.i.h.bf16 %v572_v26  ;;  %v573_v29 = vunpack.i.l.bf16 %v572_v26 }
 0x17d   :  { %v567_v8 = vpop.permute.xlu1 %566 }
 0x17e   :  { %v569_v18 = vunpack.i.h.bf16 %v567_v8  ;;  %v568_v19 = vunpack.i.l.bf16 %v567_v8 }
 0x180   :  { %v202_v27 = vsel %vm200_vm9, %v690_v23, %v569_v18  ;;  %v201_v22 = vsel %vm200_vm9, %v683_v20, %v568_v19  ;;  %v395_v23 = vld [vmem:[%s783_s3 + $0x18] sm:$0xff]  ;;  %v394_v20 = vld [vmem:[%s783_s3 + $0x10] sm:$0xff] }
 0x181   :  { %v206_v33 = vsel %vm205_vm10, %v201_v22, %v573_v29  ;;  %v207_v34 = vsel %vm205_vm10, %v202_v27, %v574_v28  ;;  %413 = vmatpush.msrb.mxu2 %v395_v23 }
 0x182   :  { %v562_v9 = vpop.permute.xlu0 %561 }
 0x183   :  { %v564_v12 = vunpack.i.h.bf16 %v562_v9  ;;  %v563_v13 = vunpack.i.l.bf16 %v562_v9  ;;  %414 = vmatpush.msrb.mxu2 %v394_v20 }
 0x185   :  { %v213_v21 = vsel %vm210_vm11, %v208_v14, %v563_v13  ;;  %v214_v24 = vsel %vm210_vm11, %v209_v17, %v564_v12  ;;  %415 = vmatpush.msrb.mxu2 %v393_v39 }
 0x186   :  { %v216_v25 = vpack.c.bf16 %v214_v24, %v213_v21  ;;  %v580_v21 = vld [vmem:[%s783_s3 + $0x20] ss:$0 sm:$0xff] }
 0x187   :  { %416 = vmatpush.msrb.mxu2 %v392_v40 }
 0x188   :  { %297 = vmatmul.bf16.vlgmr.msra.gmra.mxu2 %v216_v25 }
 0x18a   :  { %v577_v30 = vpop.permute.xlu0 %576 }
 0x18b   :  { %v579_v31 = vunpack.i.h.bf16 %v577_v30  ;;  %v578_v32 = vunpack.i.l.bf16 %v577_v30 }
 0x18d   :  { %v211_v35 = vsel %vm210_vm11, %v206_v33, %v578_v32  ;;  %v212_v36 = vsel %vm210_vm11, %v207_v34, %v579_v31 }
 0x18e   :  { %v215_v37 = vpack.c.bf16 %v212_v36, %v211_v35 }
 0x190   :  { %292 = vmatmul.bf16.vlgmr.msra.gmra.mxu1 %v215_v37 }
 0x20b   :  { %v298_v43 = vpop.f32.mrf.mxu2 }
 0x20c   :  { %v299_v50 = vadd.f32 %v298_v43, %v235_v44 }
 0x20d   :  { %v293_v45 = vpop.f32.mrf.mxu1 }
 0x20e   :  { %v294_v53 = vadd.f32 %v293_v45, %v235_v44  ;;  %v305_v56 = vmax.f32 %v299_v50, 0.0 }
 0x210   :  { %v303_v60 = vmax.f32 %v294_v53, 0.0  ;;  %v381_v16 = vsel %vm200_vm9, %v305_v56, -inf }
 0x212   :  { %v372_v2 = vsel %vm200_vm9, %v303_v60, -inf }
 0x213   :  { %v300_v54 = vpop.f32.mrf.mxu2 }
 0x214   :  { %v301_v15 = vadd.f32 %v300_v54, %v235_v44 }
 0x215   :  { %v295_v57 = vpop.f32.mrf.mxu1 }
 0x216   :  { %v306_v58 = vmax.f32 %v301_v15, 0.0  ;;  %v296_v59 = vadd.f32 %v295_v57, %v235_v44 }
 0x218   :  { %v371_v61 = vsel %vm367_vm14, %v306_v58, 0.0  ;;  %v304_v62 = vmax.f32 %v296_v59, 0.0 }
 0x219   :  { %v382_v63 = vsel %vm200_vm9, %v371_v61, -inf }
 0x21a   :  { %v383_v0 = vmax.f32 %v381_v16, %v382_v63  ;;  %v369_v1 = vsel %vm365_vm15, %v304_v62, 0.0 }
 0x21b   :  { %v373_v3 = vsel %vm200_vm9, %v369_v1, -inf }
 0x21c   :  { %v384_v4 = vrot.slane %v383_v0, 4  ;;  %v374_v5 = vmax.f32 %v372_v2, %v373_v3 }
 0x21e   :  { %v385_v6 = vmax.f32 %v383_v0, %v384_v4  ;;  %v375_v7 = vrot.slane %v374_v5, 4 }
 0x220   :  { %v386_v8 = vrot.slane %v385_v6, 2  ;;  %v376_v9 = vmax.f32 %v374_v5, %v375_v7 }
 0x222   :  { %v387_v10 = vmax.f32 %v385_v6, %v386_v8  ;;  %v377_v11 = vrot.slane %v376_v9, 2 }
 0x224   :  { %v378_v12 = vmax.f32 %v376_v9, %v377_v11  ;;  %v388_v13 = vrot.slane %v387_v10, 1 }
 0x226   :  { %v379_v14 = vrot.slane %v378_v12, 1  ;;  %v389_v18 = vmax.f32 %v387_v10, %v388_v13 }
 0x228   :  { %v380_v17 = vmax.f32 %v378_v12, %v379_v14 }
 0x22a   :  { %v391_v19 = vsel %vm390_vm0, %v380_v17, %v389_v18 }
 0x22b   :  { %507 = vmatmul.msk.f32.vlgmr.msrb.gmra.mxu2 %vm200_vm9, %v391_v19 }
 0x2ae   :  { %v418_v24 = vpop.f32.mrf.mxu2 }
 0x2af   :  { %v419_v25 = vadd.f32 %v580_v21, %v418_v24 }
 0x2b1   :  { %422 = vst.msk [vmem:[#allocation2] sm:$0x3] %vm421_vm1, %v419_v25 }
 0x2b2   :  { %433 = dma.vmem_to_hbm [thread:$0]  %s429_s14, 32, %s431_s17, [#allocation3]  }
 0x2b3   :  { %605 = dma.done.wait [#allocation3], 32  }
 0x2b4   :  { %606 = vsyncadd [#allocation3], 4294967264 }
 0x2b5   :  { %438 = vsyncpa [#allocation3], 1 }

</bundles_post_ra>
